<compile_context>
chip_gen: v5e
topology: v5e:2x2
jax: 0.10.0
libtpu: 0.0.40
codegen_flags: <defaults>
</compile_context>

<pallas_src>
import functools

import jax
import jax.numpy as jnp
from jax import lax
from jax.experimental import pallas as pl
from jax.experimental.pallas import tpu as pltpu


def _round_up(x, m):
    return (x + m - 1) // m * m


def _conv_kernel(x_ref, w_ref, b_ref, o_ref, *, K, Wp, Lo):
    # x_ref: (1, Cin, Lf)     bf16 flat zero-padded image (one batch element)
    # w_ref: (K*K, Cout, Cin) bf16 per-tap weights
    # b_ref: (Cout, 1)        f32 bias
    # o_ref: (1, Cout, Lo)    output in flat padded-width coords (lane-dense)
    Cout = o_ref.shape[1]
    acc = jnp.zeros((Cout, Lo), jnp.float32)
    for kh in range(K):
        for kw in range(K):
            off = kh * Wp + kw                            # static offset
            tap = x_ref[0, :, pl.ds(off, Lo)]             # (Cin, Lo) bf16
            acc = acc + jnp.dot(w_ref[kh * K + kw], tap,
                                preferred_element_type=jnp.float32)
    o_ref[0] = (acc + b_ref[...]).astype(o_ref.dtype)


def conv_pallas(x_nchw, weight_oihw, bias, *, stride=1,
                compute_dtype=jnp.bfloat16):
    """PyTorch-style conv2d with padding=K//2 and bias.

    x: (N, Cin, H, W); weight: (Cout, Cin, K, K); bias: (Cout,).
    Returns (N, Cout, Ho, Wo) in the input dtype.
    """
    N, Cin, H, W = x_nchw.shape
    Cout, _, K, _ = weight_oihw.shape
    pad = K // 2
    Hp, Wp = H + 2 * pad, W + 2 * pad
    # dense (stride-1) output extents; strided output is a subsample of it
    Ho_d, Wo_d = Hp - K + 1, Wp - K + 1
    Ho = (H + 2 * pad - K) // stride + 1
    Wo = (W + 2 * pad - K) // stride + 1

    # lane-dense extents
    Lo = _round_up(Ho_d * Wp, 128)            # kernel output columns
    max_off = (K - 1) * Wp + (K - 1)          # largest tap offset
    Lf = _round_up(Lo + max_off, 128)         # flat input length (+slack)

    # ---- wrapper glue: bf16 cast EARLY, pad once, flatten (no transpose) ----
    x_bf = x_nchw.astype(compute_dtype)
    x_pad = jnp.pad(x_bf, ((0, 0), (0, 0), (pad, pad), (pad, pad)))
    x_flat = x_pad.reshape(N, Cin, Hp * Wp)
    x_flat = jnp.pad(x_flat, ((0, 0), (0, 0), (0, Lf - Hp * Wp)))

    # per-tap weights: (Cout, Cin, K, K) -> (K*K, Cout, Cin)
    w_taps = jnp.transpose(weight_oihw, (2, 3, 0, 1)).reshape(K * K, Cout, Cin)
    w_taps = w_taps.astype(compute_dtype)
    b2 = bias.reshape(Cout, 1).astype(jnp.float32)

    kernel = functools.partial(_conv_kernel, K=K, Wp=Wp, Lo=Lo)

    out_flat = pl.pallas_call(
        kernel,
        out_shape=jax.ShapeDtypeStruct((N, Cout, Lo), x_nchw.dtype),
        grid_spec=pltpu.PrefetchScalarGridSpec(
            num_scalar_prefetch=0,
            grid=(N,),
            in_specs=[
                pl.BlockSpec((1, Cin, Lf), lambda n: (n, 0, 0)),        # image
                pl.BlockSpec((K * K, Cout, Cin), lambda n: (0, 0, 0)),  # weights
                pl.BlockSpec((Cout, 1), lambda n: (0, 0)),              # bias
            ],
            out_specs=pl.BlockSpec((1, Cout, Lo), lambda n: (n, 0, 0)),
        ),
        compiler_params=pltpu.CompilerParams(
            dimension_semantics=("parallel",),
            vmem_limit_bytes=32 * 1024 * 1024),
    )(x_flat, w_taps, b2)

    # Crop the width-slack / tail columns: slice + reshape only (no transpose).
    out = out_flat[:, :, :Ho_d * Wp].reshape(N, Cout, Ho_d, Wp)[:, :, :, :Wo_d]
    if stride > 1:
        # TODO(synk): stride>1 computes the dense stride-1 output and subsamples.
        out = out[:, :, ::stride, ::stride]
    return out[:, :, :Ho, :Wo]


if __name__ == "__main__":
    # Module config: conv(in_channel=4, out_channel=8, kernel_size=3)
    # -> _conv with padding=1, stride=1, bias=True; no BN, no activation.
    N, Cin, H, W = 2, 4, 16, 16
    Cout, K = 8, 3

    key = jax.random.PRNGKey(0)
    kx, kw = jax.random.split(key)

    x = jax.random.normal(kx, (N, Cin, H, W), dtype=jnp.float32)
    # Deterministic init matching the module: weight ~ N(0, 0.02), bias = 0.
    weight = 0.02 * jax.random.normal(kw, (Cout, Cin, K, K), dtype=jnp.float32)
    bias = jnp.zeros((Cout,), dtype=jnp.float32)

    out = conv_pallas(x, weight, bias, stride=1)
    out = jax.block_until_ready(out)
    assert out.shape == (N, Cout, H, W), out.shape

    # Check vs XLA conv using the same bf16-operand / f32-accumulate recipe.
    ref_bf16 = lax.conv_general_dilated(
        x.astype(jnp.bfloat16), weight.astype(jnp.bfloat16),
        window_strides=(1, 1), padding=((K // 2, K // 2),) * 2,
        dimension_numbers=("NCHW", "OIHW", "NCHW"),
        preferred_element_type=jnp.float32) + bias.reshape(1, Cout, 1, 1)
    assert jnp.allclose(out, ref_bf16, atol=1e-3, rtol=1e-3), \
        float(jnp.max(jnp.abs(out - ref_bf16)))

    # Looser sanity check vs the pure-f32 reference (bf16 operand rounding).
    ref_f32 = lax.conv_general_dilated(
        x, weight, window_strides=(1, 1), padding=((K // 2, K // 2),) * 2,
        dimension_numbers=("NCHW", "OIHW", "NCHW")) + bias.reshape(1, Cout, 1, 1)
    assert jnp.allclose(out, ref_f32, atol=1e-2, rtol=1e-2)

    print("KERNEL_OK")
</pallas_src>

<mosaic_0001>
module attributes {stable_mosaic.version = 11 : i64} {
  func.func @_conv_kernel(%arg0: i32, %arg1: memref<1x4x512xbf16, #tpu.memory_space<vmem>>, %arg2: memref<9x8x4xbf16, #tpu.memory_space<vmem>>, %arg3: memref<8x1xf32, #tpu.memory_space<vmem>>, %arg4: memref<1x8x384xf32, #tpu.memory_space<vmem>>) attributes {dimension_semantics = [#tpu.dimension_semantics<parallel>], iteration_bounds = array<i64: 2>, scalar_prefetch = 0 : i64, scratch_operands = 0 : i64, tpu.core_type = #tpu.core_type<tc>, window_params = [{transform_indices = @transform_0, window_bounds = array<i64: 1, 4, 512>}, {pipeline_mode = #tpu.pipeline_mode<synchronous>, transform_indices = @transform_1, window_bounds = array<i64: 9, 8, 4>}, {pipeline_mode = #tpu.pipeline_mode<synchronous>, transform_indices = @transform_2, window_bounds = array<i64: 8, 1>}, {transform_indices = @transform_3, window_bounds = array<i64: 1, 8, 384>}]} {
    %cst = arith.constant 0.000000e+00 : f32
    %0 = vector.broadcast %cst : f32 to vector<8x384xf32>
    %c0 = arith.constant 0 : index
    %c0_0 = arith.constant 0 : index
    %c0_1 = arith.constant 0 : index
    %1 = vector.load %arg1[%c0, %c0_0, %c0_1] : memref<1x4x512xbf16, #tpu.memory_space<vmem>>, vector<1x4x384xbf16>
    %2 = vector.shape_cast %1 : vector<1x4x384xbf16> to vector<4x384xbf16>
    %c0_2 = arith.constant 0 : index
    %c0_3 = arith.constant 0 : index
    %c0_4 = arith.constant 0 : index
    %3 = vector.load %arg2[%c0_2, %c0_3, %c0_4] : memref<9x8x4xbf16, #tpu.memory_space<vmem>>, vector<1x8x4xbf16>
    %4 = vector.shape_cast %3 : vector<1x8x4xbf16> to vector<8x4xbf16>
    %cst_5 = arith.constant dense<0.000000e+00> : vector<8x384xf32>
    %5 = tpu.matmul %4, %2, %cst_5 {dimension_numbers = #tpu.dot_dimension_numbers<[1], [0], [0], [1], [0, 0, 1, 1], [], []>} : vector<8x4xbf16>, vector<4x384xbf16>, vector<8x384xf32> -> vector<8x384xf32>
    %6 = arith.addf %0, %5 : vector<8x384xf32>
    %c0_6 = arith.constant 0 : index
    %c0_7 = arith.constant 0 : index
    %c1 = arith.constant 1 : index
    %7 = vector.load %arg1[%c0_6, %c0_7, %c1] : memref<1x4x512xbf16, #tpu.memory_space<vmem>>, vector<1x4x384xbf16>
    %8 = vector.shape_cast %7 : vector<1x4x384xbf16> to vector<4x384xbf16>
    %c1_8 = arith.constant 1 : index
    %c0_9 = arith.constant 0 : index
    %c0_10 = arith.constant 0 : index
    %9 = vector.load %arg2[%c1_8, %c0_9, %c0_10] : memref<9x8x4xbf16, #tpu.memory_space<vmem>>, vector<1x8x4xbf16>
    %10 = vector.shape_cast %9 : vector<1x8x4xbf16> to vector<8x4xbf16>
    %cst_11 = arith.constant dense<0.000000e+00> : vector<8x384xf32>
    %11 = tpu.matmul %10, %8, %cst_11 {dimension_numbers = #tpu.dot_dimension_numbers<[1], [0], [0], [1], [0, 0, 1, 1], [], []>} : vector<8x4xbf16>, vector<4x384xbf16>, vector<8x384xf32> -> vector<8x384xf32>
    %12 = arith.addf %6, %11 : vector<8x384xf32>
    %c0_12 = arith.constant 0 : index
    %c0_13 = arith.constant 0 : index
    %c2 = arith.constant 2 : index
    %13 = vector.load %arg1[%c0_12, %c0_13, %c2] : memref<1x4x512xbf16, #tpu.memory_space<vmem>>, vector<1x4x384xbf16>
    %14 = vector.shape_cast %13 : vector<1x4x384xbf16> to vector<4x384xbf16>
    %c2_14 = arith.constant 2 : index
    %c0_15 = arith.constant 0 : index
    %c0_16 = arith.constant 0 : index
    %15 = vector.load %arg2[%c2_14, %c0_15, %c0_16] : memref<9x8x4xbf16, #tpu.memory_space<vmem>>, vector<1x8x4xbf16>
    %16 = vector.shape_cast %15 : vector<1x8x4xbf16> to vector<8x4xbf16>
    %cst_17 = arith.constant dense<0.000000e+00> : vector<8x384xf32>
    %17 = tpu.matmul %16, %14, %cst_17 {dimension_numbers = #tpu.dot_dimension_numbers<[1], [0], [0], [1], [0, 0, 1, 1], [], []>} : vector<8x4xbf16>, vector<4x384xbf16>, vector<8x384xf32> -> vector<8x384xf32>
    %18 = arith.addf %12, %17 : vector<8x384xf32>
    %c0_18 = arith.constant 0 : index
    %c0_19 = arith.constant 0 : index
    %c18 = arith.constant 18 : index
    %19 = vector.load %arg1[%c0_18, %c0_19, %c18] : memref<1x4x512xbf16, #tpu.memory_space<vmem>>, vector<1x4x384xbf16>
    %20 = vector.shape_cast %19 : vector<1x4x384xbf16> to vector<4x384xbf16>
    %c3 = arith.constant 3 : index
    %c0_20 = arith.constant 0 : index
    %c0_21 = arith.constant 0 : index
    %21 = vector.load %arg2[%c3, %c0_20, %c0_21] : memref<9x8x4xbf16, #tpu.memory_space<vmem>>, vector<1x8x4xbf16>
    %22 = vector.shape_cast %21 : vector<1x8x4xbf16> to vector<8x4xbf16>
    %cst_22 = arith.constant dense<0.000000e+00> : vector<8x384xf32>
    %23 = tpu.matmul %22, %20, %cst_22 {dimension_numbers = #tpu.dot_dimension_numbers<[1], [0], [0], [1], [0, 0, 1, 1], [], []>} : vector<8x4xbf16>, vector<4x384xbf16>, vector<8x384xf32> -> vector<8x384xf32>
    %24 = arith.addf %18, %23 : vector<8x384xf32>
    %c0_23 = arith.constant 0 : index
    %c0_24 = arith.constant 0 : index
    %c19 = arith.constant 19 : index
    %25 = vector.load %arg1[%c0_23, %c0_24, %c19] : memref<1x4x512xbf16, #tpu.memory_space<vmem>>, vector<1x4x384xbf16>
    %26 = vector.shape_cast %25 : vector<1x4x384xbf16> to vector<4x384xbf16>
    %c4 = arith.constant 4 : index
    %c0_25 = arith.constant 0 : index
    %c0_26 = arith.constant 0 : index
    %27 = vector.load %arg2[%c4, %c0_25, %c0_26] : memref<9x8x4xbf16, #tpu.memory_space<vmem>>, vector<1x8x4xbf16>
    %28 = vector.shape_cast %27 : vector<1x8x4xbf16> to vector<8x4xbf16>
    %cst_27 = arith.constant dense<0.000000e+00> : vector<8x384xf32>
    %29 = tpu.matmul %28, %26, %cst_27 {dimension_numbers = #tpu.dot_dimension_numbers<[1], [0], [0], [1], [0, 0, 1, 1], [], []>} : vector<8x4xbf16>, vector<4x384xbf16>, vector<8x384xf32> -> vector<8x384xf32>
    %30 = arith.addf %24, %29 : vector<8x384xf32>
    %c0_28 = arith.constant 0 : index
    %c0_29 = arith.constant 0 : index
    %c20 = arith.constant 20 : index
    %31 = vector.load %arg1[%c0_28, %c0_29, %c20] : memref<1x4x512xbf16, #tpu.memory_space<vmem>>, vector<1x4x384xbf16>
    %32 = vector.shape_cast %31 : vector<1x4x384xbf16> to vector<4x384xbf16>
    %c5 = arith.constant 5 : index
    %c0_30 = arith.constant 0 : index
    %c0_31 = arith.constant 0 : index
    %33 = vector.load %arg2[%c5, %c0_30, %c0_31] : memref<9x8x4xbf16, #tpu.memory_space<vmem>>, vector<1x8x4xbf16>
    %34 = vector.shape_cast %33 : vector<1x8x4xbf16> to vector<8x4xbf16>
    %cst_32 = arith.constant dense<0.000000e+00> : vector<8x384xf32>
    %35 = tpu.matmul %34, %32, %cst_32 {dimension_numbers = #tpu.dot_dimension_numbers<[1], [0], [0], [1], [0, 0, 1, 1], [], []>} : vector<8x4xbf16>, vector<4x384xbf16>, vector<8x384xf32> -> vector<8x384xf32>
    %36 = arith.addf %30, %35 : vector<8x384xf32>
    %c0_33 = arith.constant 0 : index
    %c0_34 = arith.constant 0 : index
    %c36 = arith.constant 36 : index
    %37 = vector.load %arg1[%c0_33, %c0_34, %c36] : memref<1x4x512xbf16, #tpu.memory_space<vmem>>, vector<1x4x384xbf16>
    %38 = vector.shape_cast %37 : vector<1x4x384xbf16> to vector<4x384xbf16>
    %c6 = arith.constant 6 : index
    %c0_35 = arith.constant 0 : index
    %c0_36 = arith.constant 0 : index
    %39 = vector.load %arg2[%c6, %c0_35, %c0_36] : memref<9x8x4xbf16, #tpu.memory_space<vmem>>, vector<1x8x4xbf16>
    %40 = vector.shape_cast %39 : vector<1x8x4xbf16> to vector<8x4xbf16>
    %cst_37 = arith.constant dense<0.000000e+00> : vector<8x384xf32>
    %41 = tpu.matmul %40, %38, %cst_37 {dimension_numbers = #tpu.dot_dimension_numbers<[1], [0], [0], [1], [0, 0, 1, 1], [], []>} : vector<8x4xbf16>, vector<4x384xbf16>, vector<8x384xf32> -> vector<8x384xf32>
    %42 = arith.addf %36, %41 : vector<8x384xf32>
    %c0_38 = arith.constant 0 : index
    %c0_39 = arith.constant 0 : index
    %c37 = arith.constant 37 : index
    %43 = vector.load %arg1[%c0_38, %c0_39, %c37] : memref<1x4x512xbf16, #tpu.memory_space<vmem>>, vector<1x4x384xbf16>
    %44 = vector.shape_cast %43 : vector<1x4x384xbf16> to vector<4x384xbf16>
    %c7 = arith.constant 7 : index
    %c0_40 = arith.constant 0 : index
    %c0_41 = arith.constant 0 : index
    %45 = vector.load %arg2[%c7, %c0_40, %c0_41] : memref<9x8x4xbf16, #tpu.memory_space<vmem>>, vector<1x8x4xbf16>
    %46 = vector.shape_cast %45 : vector<1x8x4xbf16> to vector<8x4xbf16>
    %cst_42 = arith.constant dense<0.000000e+00> : vector<8x384xf32>
    %47 = tpu.matmul %46, %44, %cst_42 {dimension_numbers = #tpu.dot_dimension_numbers<[1], [0], [0], [1], [0, 0, 1, 1], [], []>} : vector<8x4xbf16>, vector<4x384xbf16>, vector<8x384xf32> -> vector<8x384xf32>
    %48 = arith.addf %42, %47 : vector<8x384xf32>
    %c0_43 = arith.constant 0 : index
    %c0_44 = arith.constant 0 : index
    %c38 = arith.constant 38 : index
    %49 = vector.load %arg1[%c0_43, %c0_44, %c38] : memref<1x4x512xbf16, #tpu.memory_space<vmem>>, vector<1x4x384xbf16>
    %50 = vector.shape_cast %49 : vector<1x4x384xbf16> to vector<4x384xbf16>
    %c8 = arith.constant 8 : index
    %c0_45 = arith.constant 0 : index
    %c0_46 = arith.constant 0 : index
    %51 = vector.load %arg2[%c8, %c0_45, %c0_46] : memref<9x8x4xbf16, #tpu.memory_space<vmem>>, vector<1x8x4xbf16>
    %52 = vector.shape_cast %51 : vector<1x8x4xbf16> to vector<8x4xbf16>
    %cst_47 = arith.constant dense<0.000000e+00> : vector<8x384xf32>
    %53 = tpu.matmul %52, %50, %cst_47 {dimension_numbers = #tpu.dot_dimension_numbers<[1], [0], [0], [1], [0, 0, 1, 1], [], []>} : vector<8x4xbf16>, vector<4x384xbf16>, vector<8x384xf32> -> vector<8x384xf32>
    %54 = arith.addf %48, %53 : vector<8x384xf32>
    %c0_48 = arith.constant 0 : index
    %c0_49 = arith.constant 0 : index
    %55 = vector.load %arg3[%c0_48, %c0_49] : memref<8x1xf32, #tpu.memory_space<vmem>>, vector<8x1xf32>
    %56 = vector.broadcast %55 : vector<8x1xf32> to vector<8x384xf32>
    %57 = arith.addf %54, %56 : vector<8x384xf32>
    %c0_50 = arith.constant 0 : index
    %c0_51 = arith.constant 0 : index
    %c0_52 = arith.constant 0 : index
    %58 = vector.load %arg4[%c0_50, %c0_51, %c0_52] : memref<1x8x384xf32, #tpu.memory_space<vmem>>, vector<1x8x384xf32>
    %59 = vector.shape_cast %58 : vector<1x8x384xf32> to vector<8x384xf32>
    %60 = vector.shape_cast %57 : vector<8x384xf32> to vector<1x8x384xf32>
    tpu.vector_store %arg4[%c0_50, %c0_51, %c0_52], %60 {strides = array<i32>} : memref<1x8x384xf32, #tpu.memory_space<vmem>>, vector<1x8x384xf32>,
    return
  }
  func.func @transform_0(%arg0: i32) -> (i32, i32, i32) {
    %c0_i32 = arith.constant 0 : i32
    %c0_i32_0 = arith.constant 0 : i32
    %c0_i32_1 = arith.constant 0 : i32
    return %arg0, %c0_i32, %c0_i32_0 : i32, i32, i32
  }
  func.func @transform_1(%arg0: i32) -> (i32, i32, i32) {
    %c0_i32 = arith.constant 0 : i32
    %c0_i32_0 = arith.constant 0 : i32
    %c0_i32_1 = arith.constant 0 : i32
    %c0_i32_2 = arith.constant 0 : i32
    return %c0_i32, %c0_i32_0, %c0_i32_1 : i32, i32, i32
  }
  func.func @transform_2(%arg0: i32) -> (i32, i32) {
    %c0_i32 = arith.constant 0 : i32
    %c0_i32_0 = arith.constant 0 : i32
    %c0_i32_1 = arith.constant 0 : i32
    return %c0_i32, %c0_i32_0 : i32, i32
  }
  func.func @transform_3(%arg0: i32) -> (i32, i32, i32) {
    %c0_i32 = arith.constant 0 : i32
    %c0_i32_0 = arith.constant 0 : i32
    %c0_i32_1 = arith.constant 0 : i32
    return %arg0, %c0_i32, %c0_i32_0 : i32, i32, i32
  }
}

</mosaic_0001>

<bundles_post_ra>
// kernel: tpu_custom_call.1
= control target key start
LH: loop header
LB: loop body
LE: loop exit
PB: predicated region body
PF: predicated region fallthrough
CT: control target
= control target key end

     0   :  { %8 = vsyncpa [#allocation3], 0  ;;  %s1341_s0 = inlined_call_operand.vmem [shape: bf16[2,4,512], index: 0, kind: input, shape index: {}]   ;;  %s1342_s1 = inlined_call_operand.vmem [shape: bf16[9,8,4], index: 1, kind: input, shape index: {}]   ;;  %s1343_s2 = inlined_call_operand.vmem [shape: f32[8,1], index: 2, kind: input, shape index: {}]   ;;  %s1344_s3 = inlined_call_operand.hbm [shape: f32[2,8,384], index: 3, kind: output, shape index: {}]  }
   0x1   :  { %10 = vsyncpa [#allocation3 + $0x1], 0  ;;  %s1134_s12 = smov 0   ;;  %s1136_s13 = smov 0  }
   0x2   :  { %s1138_s14 = smov 0   ;;  %s1140_s15 = smov 0  }
   0x3 LB: > { %s1155_s16 = sadd.s32 4294967295, %s1103_s15   ;;  %s944_s17 = sadd.s32 4294967294, %s1103_s15   ;;  %s1103_s15 = sphi %s1140_s15, %s1350_s15   ;;  %s1099_s14 = sphi %s1138_s14, %s1349_s14   ;;  %s1095_s13 = sphi %s1136_s13, %s1348_s13   ;;  %s1091_s12 = sphi %s1134_s12, %s1347_s12  }
   0x4   : > { %s1159_s18 = sadd.s32 1, %s1103_s15   ;;  %s91_s19 = sadd.s32 1, %s1099_s14 }
   0x5   : > { %s88_s20 = ssub.s32 %s1103_s15, %s1159_s18  ;;  %p101_p0 = scmp.ne.s32.totalorder %s1099_s14, %s1095_s13 }
   0x6   : > { %p89_p1 = scmp.eq.s32.totalorder %s88_s20, 0  ;;  %p102_p2 = scmp.eq.s32.totalorder %s1155_s16, 1 }
   0x7   : > { %p107_p3 = scmp.ne.s32.totalorder %s1095_s13, %s1091_s12  ;;  %p108_p4 = scmp.eq.s32.totalorder %s944_s17, 1 }
   0x8   : > { %s1170_s21 = scalar_select %p89_p1, %s1099_s14, %s91_s19  }
   0x9   : > { %p1172_p5 = por %p102_p2, %p101_p0  ;;  %p1176_p6 = por %p108_p4, %p107_p3 }
   0xa   : > { %p947_p7 = scmp.ge.s32.totalorder %s1103_s15, 1  ;;  %p140_p8 = scmp.lt.s32.totalorder %s1103_s15, 3 }
   0xc   : > { %p141_p9 = pnand %p947_p7, %p140_p8 }
   0xd   : > { %p164_p10 = scmp.lt.s32.totalorder (!%p141_p9), %s1155_s16, 1  ;;  %s1105_s29 = smov (!%p141_p9), 127  }
   0xe   : > { %144 = sbr.rel (%p141_p9) target bundleno = 399 (0x18f), region = 32  ;;  %s1106_s30 = smov (!%p141_p9), 126  }
   0xf   : > { %s1107_s4 = smov (!%p141_p9), 110   ;;  %s1108_s5 = smov (!%p141_p9), 109  }
  0x10   : > { %s1109_s6 = smov (!%p141_p9), 108   ;;  %s1110_s7 = smov (!%p141_p9), 92  }
  0x11   : > { %s1111_s8 = smov (!%p141_p9), 91   ;;  %s1112_s9 = smov (!%p141_p9), 90  }
  0x12   : > { %s161_s17 = sand.u32 (!%p141_p9), 1, %s1095_s13   ;;  %s990_s20 = smul.u32 (!%p141_p9), 24, %s1155_s16 }
  0x13   : > { %s165_s24 = scalar_select %p164_p10, %s1155_s16, 1  ;;  %vm201_vm0 = vcmask 1041408   ;;  %v171_v38 = vld [vmem:[%s1342_s1] sm:$0xf]  ;;  %vm197_vm1 = vcmask 31744   ;;  %vm324_vm2 = vcmask 1031168  }
  0x14   : > { %vm193_vm3 = vcmask 1039360   ;;  %v950_v55 = vld [vmem:[%s1342_s1 + $0x4] sm:$0xf]  ;;  %vm403_vm4 = vcmask 900096   ;;  %v957_v62 = vld [vmem:[%s1342_s1 + $0x8] sm:$0xf]  ;;  %s880_s26 = scalar_lea.hbm %s1344_s3, %s990_s20 }
  0x15   : > { %s988_s25 = sshll.u32 %s165_s24, 3  ;;  %vm482_vm5 = vcmask 891904   ;;  %vm561_vm6 = vcmask 883712   ;;  %vm640_vm7 = vcmask 752640   ;;  %vm719_vm8 = vcmask 744448   ;;  %s989_s19 = smul.u32 24, %s161_s17 }
  0x16   : > { %s168_s28 = scalar_lea.vmem %s1341_s0, %s988_s25  ;;  %vm798_vm9 = vcmask 736256   ;;  %s869_s16 = scalar_lea.sflag [#allocation3], %s161_s17 }
  0x17   : > { %v1187_v0 = vld [vmem:[%s168_s28] sm:$0xff]  ;;  %s163_s27 = scalar_lea.vmem [#allocation2], %s989_s19 }
  0x18   : > { %176 = vst [vmem:[#allocation1] ss:$4 sm:$0xff] %v1187_v0  ;;  %v170_v1 = vld [vmem:[%s168_s28] sm:$0x3f]  ;;  %s882_s28 = sshll.u32 %s163_s27, 4  ;;  %s883_s28 = int_to_ptr.vmem [resolvable:$true] %s882_s28 }
  0x1f   : > { %v181_v2 = vld.sshfl [vmem:[#allocation1 + $0x10] sm:$0xff pattern:$0x73625140]  ;;  %v177_v3 = vld.sshfl [vmem:[#allocation1] sm:$0xff pattern:$0x73625140] }
  0x20   : > { %189 = vrot.lane.b32.xlu0 %v181_v2, %s1105_s29  ;;  %185 = vrot.lane.b32.xlu1 %v177_v3, %s1105_s29  ;;  %v183_v4 = vld.sshfl [vmem:[#allocation1 + $0x18] sm:$0xff pattern:$0x73625140]  ;;  %v179_v5 = vld.sshfl [vmem:[#allocation1 + $0x8] sm:$0xff pattern:$0x73625140] }
  0x21   : > { %251 = vst [vmem:[#allocation1] ss:$4 sm:$0xff] %v170_v1 }
  0x28   : > { %191 = vrot.lane.b32.xlu0 %v183_v4, %s1105_s29  ;;  %187 = vrot.lane.b32.xlu1 %v179_v5, %s1105_s29  ;;  %v1190_v6 = vld.sshfl [vmem:[#allocation1] sm:$0xff pattern:$0x73625140]  ;;  %v1192_v7 = vld.sshfl [vmem:[#allocation1 + $0x8] sm:$0xff pattern:$0x73625140] }
  0x29   : > { %v1194_v8 = vld.sshfl [vmem:[#allocation1 + $0x10] sm:$0xff pattern:$0x73625140]  ;;  %v258_v35 = vsel %vm201_vm0, %v1190_v6, 0  ;;  %v260_v46 = vsel %vm201_vm0, %v1192_v7, 0  ;;  %s884_s29 = sshll.u32 %s880_s26, 4  ;;  %s885_s29 = int_to_ptr.hbm [resolvable:$true] %s884_s29 }
  0x2a   : > { %307 = vst [vmem:[#allocation1] ss:$4 sm:$0xff] %v1187_v0  ;;  %271 = vmatpush.bf16.msra.mxu3 %v258_v35  ;;  %v262_v50 = vsel %vm201_vm0, %v1194_v8, 0 }
  0x2d   : > { %954 = vmatmul.msk.bf16.vlgmr.msra.gmra.mxu3 %vm197_vm1, %v171_v38 }
  0x31   : > { %v310_v9 = vld.sshfl [vmem:[#allocation1 + $0x8] sm:$0xff pattern:$0x73625140]  ;;  %v314_v10 = vld.sshfl [vmem:[#allocation1 + $0x18] sm:$0xff pattern:$0x73625140] }
  0x32   : > { %v312_v11 = vld.sshfl [vmem:[#allocation1 + $0x10] sm:$0xff pattern:$0x73625140]  ;;  %v308_v12 = vld.sshfl [vmem:[#allocation1] sm:$0xff pattern:$0x73625140] }
  0x33   : > { %320 = vrot.lane.b32.xlu0 %v312_v11, %s1106_s30  ;;  %316 = vrot.lane.b32.xlu2 %v308_v12, %s1106_s30  ;;  %386 = vst [vmem:[#allocation1] ss:$4 sm:$0xff] %v1187_v0  ;;  %v961_v12 = vld [vmem:[%s1342_s1 + $0xc] sm:$0xf] }
  0x3a   : > { %v389_v13 = vld.sshfl [vmem:[#allocation1 + $0x8] sm:$0xff pattern:$0x73625140]  ;;  %v391_v14 = vld.sshfl [vmem:[#allocation1 + $0x10] sm:$0xff pattern:$0x73625140] }
  0x3b   : > { %v393_v15 = vld.sshfl [vmem:[#allocation1 + $0x18] sm:$0xff pattern:$0x73625140]  ;;  %397 = vrot.lane.b32.xlu1 %v389_v13, %s1107_s4  ;;  %322 = vrot.lane.b32.xlu0 %v314_v10, %s1106_s30  ;;  %v387_v16 = vld.sshfl [vmem:[#allocation1] sm:$0xff pattern:$0x73625140] }
  0x3c   : > { %318 = vrot.lane.b32.xlu2 %v310_v9, %s1106_s30  ;;  %465 = vst [vmem:[#allocation1] ss:$4 sm:$0xff] %v1187_v0  ;;  %s1055_s30 = sshra.s32 %s885_s29, 4  ;;  %s1056_s30 = int_to_ptr.hbm [resolvable:$true] %s1055_s30 }
  0x3d   : > { %p1062_p0 = scmp.lt.s32.totalorder %s1056_s30, %s1344_s3 }
  0x43   : > { %395 = vrot.lane.b32.xlu1 %v387_v16, %s1107_s4  ;;  %v470_v17 = vld.sshfl [vmem:[#allocation1 + $0x10] sm:$0xff pattern:$0x73625140]  ;;  %v466_v18 = vld.sshfl [vmem:[#allocation1] sm:$0xff pattern:$0x73625140] }
  0x44   : > { %478 = vrot.lane.b32.xlu0 %v470_v17, %s1108_s5  ;;  %v472_v19 = vld.sshfl [vmem:[#allocation1 + $0x18] sm:$0xff pattern:$0x73625140]  ;;  %v468_v20 = vld.sshfl [vmem:[#allocation1 + $0x8] sm:$0xff pattern:$0x73625140]  ;;  %399 = vrot.lane.b32.xlu2 %v391_v14, %s1107_s4 }
  0x45   : > { %544 = vst [vmem:[#allocation1] ss:$4 sm:$0xff] %v1187_v0 }
  0x4b   : > { %480 = vrot.lane.b32.xlu1 %v472_v19, %s1108_s5 }
  0x4c   : > { %476 = vrot.lane.b32.xlu0 %v468_v20, %s1108_s5  ;;  %v547_v21 = vld.sshfl [vmem:[#allocation1 + $0x8] sm:$0xff pattern:$0x73625140]  ;;  %v549_v22 = vld.sshfl [vmem:[#allocation1 + $0x10] sm:$0xff pattern:$0x73625140]  ;;  %401 = vrot.lane.b32.xlu2 %v393_v15, %s1107_s4 }
  0x4d   : > { %v551_v23 = vld.sshfl [vmem:[#allocation1 + $0x18] sm:$0xff pattern:$0x73625140]  ;;  %v545_v24 = vld.sshfl [vmem:[#allocation1] sm:$0xff pattern:$0x73625140] }
  0x4e   : > { %623 = vst [vmem:[#allocation1] ss:$4 sm:$0xff] %v1187_v0  ;;  %s1057_s4 = scalar_lea.hbm %s1056_s30, 24 }
  0x4f   : > { %p1058_p11 = scmp.ne.s32.totalorder %s1056_s30, %s1057_s4 }
  0x51   : > { %p1059_p12 = pnand %p1058_p11, %p1172_p5 }
  0x53   : > { %553 = vrot.lane.b32.xlu1 %v545_v24, %s1109_s6  ;;  %p1060_p13 = pneg %p1059_p12 }
  0x54   : > { %474 = vrot.lane.b32.xlu2 %v466_v18, %s1108_s5 }
  0x55   : > { %v630_v25 = vld.sshfl [vmem:[#allocation1 + $0x18] sm:$0xff pattern:$0x73625140]  ;;  %v624_v26 = vld.sshfl [vmem:[#allocation1] sm:$0xff pattern:$0x73625140] }
  0x56   : > { %632 = vrot.lane.b32.xlu0 %v624_v26, %s1110_s7  ;;  %v626_v27 = vld.sshfl [vmem:[#allocation1 + $0x8] sm:$0xff pattern:$0x73625140]  ;;  %v628_v28 = vld.sshfl [vmem:[#allocation1 + $0x10] sm:$0xff pattern:$0x73625140] }
  0x57   : > { %702 = vst [vmem:[#allocation1] ss:$4 sm:$0xff] %v1187_v0 }
  0x5b   : > { %634 = vrot.lane.b32.xlu1 %v626_v27, %s1110_s7 }
  0x5c   : > { %555 = vrot.lane.b32.xlu2 %v547_v21, %s1109_s6 }
  0x5e   : > { %559 = vrot.lane.b32.xlu0 %v551_v23, %s1109_s6  ;;  %v703_v29 = vld.sshfl [vmem:[#allocation1] sm:$0xff pattern:$0x73625140]  ;;  %v705_v30 = vld.sshfl [vmem:[#allocation1 + $0x8] sm:$0xff pattern:$0x73625140] }
  0x5f   : > { %v707_v31 = vld.sshfl [vmem:[#allocation1 + $0x10] sm:$0xff pattern:$0x73625140]  ;;  %v709_v32 = vld.sshfl [vmem:[#allocation1 + $0x18] sm:$0xff pattern:$0x73625140] }
  0x60   : > { %781 = vst [vmem:[#allocation1] ss:$4 sm:$0xff] %v1187_v0 }
  0x63   : > { %636 = vrot.lane.b32.xlu1 %v628_v28, %s1110_s7 }
  0x64   : > { %557 = vrot.lane.b32.xlu2 %v549_v22, %s1109_s6 }
  0x66   : > { %715 = vrot.lane.b32.xlu0 %v707_v31, %s1111_s8 }
  0x67   : > { %v786_v33 = vld.sshfl [vmem:[#allocation1 + $0x10] sm:$0xff pattern:$0x73625140]  ;;  %v782_v34 = vld.sshfl [vmem:[#allocation1] sm:$0xff pattern:$0x73625140] }
  0x68   : > { %v784_v36 = vld.sshfl [vmem:[#allocation1 + $0x8] sm:$0xff pattern:$0x73625140]  ;;  %v788_v37 = vld.sshfl [vmem:[#allocation1 + $0x18] sm:$0xff pattern:$0x73625140] }
  0x6b   : > { %638 = vrot.lane.b32.xlu1 %v630_v25, %s1110_s7  ;;  %s1061_s7 = scalar_lea.hbm %s1344_s3, 48 }
  0x6c   : > { %713 = vrot.lane.b32.xlu2 %v705_v30, %s1111_s8  ;;  %p1063_p1 = scmp.lt.s32.totalorder %s1061_s7, %s1057_s4 }
  0x6e   : > { %717 = vrot.lane.b32.xlu0 %v709_v32, %s1111_s8  ;;  %v965_v32 = vld [vmem:[%s1342_s1 + $0x10] sm:$0xf]  ;;  %p1064_p2 = por %p1063_p1, %p1062_p0 }
  0x70   : > { %p1065_p3 = pnand %p1064_p2, %p1060_p13 }
  0x73   : > { %794 = vrot.lane.b32.xlu1 %v786_v33, %s1112_s9 }
  0x74   : > { %711 = vrot.lane.b32.xlu2 %v703_v29, %s1111_s8  ;;  %v969_v29 = vld [vmem:[%s1342_s1 + $0x14] sm:$0xf] }
  0x76   : > { %790 = vrot.lane.b32.xlu0 %v782_v34, %s1112_s9 }
  0x7b   : > { %792 = vrot.lane.b32.xlu1 %v784_v36, %s1112_s9 }
  0x7c   : > { %796 = vrot.lane.b32.xlu2 %v788_v37, %s1112_s9 }
  0x8d   : > { %v317_v39 = vpop.permute.xlu2 %316 }
  0x92   : > { %v190_v40 = vpop.permute.xlu0 %189  ;;  %v186_v41 = vpop.permute.xlu1 %185 }
  0x96   : > { %v319_v42 = vpop.permute.xlu2 %318 }
  0x97   : > { %v325_v43 = vsel %vm324_vm2, %v317_v39, %v319_v42 }
  0x98   : > { %v332_v54 = vsel %vm201_vm0, %v325_v43, 0 }
  0x9a   : > { %v192_v44 = vpop.permute.xlu0 %191  ;;  %v188_v45 = vpop.permute.xlu1 %187 }
  0x9b   : > { %v194_v47 = vsel %vm193_vm3, %v186_v41, %v188_v45  ;;  %v195_v48 = vsel %vm193_vm3, %v188_v45, %v190_v40  ;;  %v196_v49 = vsel %vm193_vm3, %v190_v40, %v192_v44  ;;  %v973_v44 = vld [vmem:[%s1342_s1 + $0x18] sm:$0xf] }
  0x9c   : > { %v203_v51 = vsel %vm201_vm0, %v194_v47, 0  ;;  %v206_v52 = vsel %vm201_vm0, %v195_v48, 0  ;;  %v209_v53 = vsel %vm201_vm0, %v196_v49, 0 }
  0x9d   : > { %218 = vmatpush.bf16.msra.mxu0 %v203_v51  ;;  %231 = vmatpush.bf16.msra.mxu1 %v206_v52 }
  0x9e   : > { %244 = vmatpush.bf16.msra.mxu2 %v209_v53  ;;  %v400_v56 = vpop.permute.xlu2 %399 }
  0xa0   : > { %951 = vmatmul.msk.bf16.vlgmr.msra.gmra.mxu0 %vm197_vm1, %v950_v55  ;;  %952 = vmatmul.msk.bf16.vlgmr.msra.gmra.mxu1 %vm197_vm1, %v950_v55 }
  0xa1   : > { %284 = vmatpush.bf16.msrb.mxu0 %v260_v46  ;;  %297 = vmatpush.bf16.msrb.mxu1 %v262_v50 }
  0xa2   : > { %347 = vmatpush.bf16.msrb.mxu2 %v332_v54 }
  0xa3   : > { %953 = vmatmul.msk.bf16.vlgmr.msra.gmra.mxu2 %vm197_vm1, %v950_v55 }
  0xa5   : > { %v321_v57 = vpop.permute.xlu0 %320 }
  0xa6   : > { %v326_v58 = vsel %vm324_vm2, %v319_v42, %v321_v57  ;;  %v402_v59 = vpop.permute.xlu2 %401 }
  0xa7   : > { %v335_v60 = vsel %vm201_vm0, %v326_v58, 0  ;;  %v406_v61 = vsel %vm403_vm4, %v400_v56, %v402_v59 }
  0xa8   : > { %360 = vmatpush.bf16.msrb.mxu3 %v335_v60  ;;  %v417_v63 = vsel %vm201_vm0, %v406_v61, 0 }
  0xab   : > { %959 = vmatmul.msk.bf16.vlgmr.msrb.gmra.mxu3 %vm197_vm1, %v957_v62 }
  0xac   : > { %452 = vmatpush.bf16.msra.mxu3 %v417_v63 }
  0xad   : > { %v398_v0 = vpop.permute.xlu1 %397  ;;  %v323_v1 = vpop.permute.xlu0 %322 }
  0xae   : > { %v405_v2 = vsel %vm403_vm4, %v398_v0, %v400_v56  ;;  %v327_v3 = vsel %vm324_vm2, %v321_v57, %v323_v1  ;;  %v475_v4 = vpop.permute.xlu2 %474  ;;  %v977_v57 = vld [vmem:[%s1342_s1 + $0x1c] sm:$0xf] }
  0xaf   : > { %v414_v5 = vsel %vm201_vm0, %v405_v2, 0  ;;  %v338_v6 = vsel %vm201_vm0, %v327_v3, 0  ;;  %v1113_v2 = vmov 0   ;;  %v856_v3 = vld [vmem:[%s1343_s2] sm:$0xff] }
  0xb0   : > { %373 = vmatpush.bf16.msra.mxu0 %v338_v6  ;;  %439 = vmatpush.bf16.msra.mxu2 %v414_v5  ;;  %v273_v1 = vpop.f32.mrf.mxu3 }
  0xb1   : > { %955 = vmatmul.msk.bf16.vlgmr.msrb.gmra.mxu0 %vm197_vm1, %v171_v38  ;;  %956 = vmatmul.msk.bf16.vlgmr.msrb.gmra.mxu1 %vm197_vm1, %v171_v38 }
  0xb2   : > { %1039 = vset.pattern.permute.xlu2 %v1113_v2  ;;  %1040 = vset.pattern.permute.xlu0 %v1113_v2 }
  0xb3   : > { %958 = vmatmul.msk.bf16.vlgmr.msrb.gmra.mxu2 %vm197_vm1, %v957_v62  ;;  %859 = vperm.xlu2 %1039, %v856_v3  }
  0xb5   : > { %v396_v7 = vpop.permute.xlu1 %395 }
  0xb6   : > { %v404_v8 = vsel %vm403_vm4, %v396_v7, %v398_v0  ;;  %v479_v9 = vpop.permute.xlu0 %478  ;;  %v556_v10 = vpop.permute.xlu2 %555  ;;  %v981_v0 = vld [vmem:[%s1342_s1 + $0x20] sm:$0xf] }
  0xb7   : > { %v411_v11 = vsel %vm201_vm0, %v404_v8, 0 }
  0xb8   : > { %426 = vmatpush.bf16.msra.mxu1 %v411_v11 }
  0xbb   : > { %964 = vmatmul.msk.bf16.vlgmr.msra.gmra.mxu3 %vm197_vm1, %v961_v12 }
  0xbd   : > { %v481_v13 = vpop.permute.xlu1 %480 }
  0xbe   : > { %v485_v14 = vsel %vm482_vm5, %v479_v9, %v481_v13  ;;  %v477_v15 = vpop.permute.xlu0 %476  ;;  %v558_v16 = vpop.permute.xlu2 %557 }
  0xbf   : > { %v496_v17 = vsel %vm201_vm0, %v485_v14, 0  ;;  %v484_v18 = vsel %vm482_vm5, %v477_v15, %v479_v9  ;;  %v483_v19 = vsel %vm482_vm5, %v475_v4, %v477_v15  ;;  %v563_v20 = vsel %vm561_vm6, %v556_v10, %v558_v16  ;;  %v275_v4 = vpop.f32.mrf.mxu3 }
  0xc0   : > { %v493_v21 = vsel %vm201_vm0, %v484_v18, 0  ;;  %v490_v22 = vsel %vm201_vm0, %v483_v19, 0  ;;  %531 = vmatpush.bf16.msrb.mxu2 %v496_v17  ;;  %v572_v23 = vsel %vm201_vm0, %v563_v20, 0 }
  0xc1   : > { %518 = vmatpush.bf16.msrb.mxu1 %v493_v21  ;;  %960 = vmatmul.msk.bf16.vlgmr.msra.gmra.mxu0 %vm197_vm1, %v957_v62 }
  0xc2   : > { %962 = vmatmul.msk.bf16.vlgmr.msra.gmra.mxu1 %vm197_vm1, %v961_v12  ;;  %505 = vmatpush.bf16.msrb.mxu0 %v490_v22 }
  0xc3   : > { %963 = vmatmul.msk.bf16.vlgmr.msra.gmra.mxu2 %vm197_vm1, %v961_v12 }
  0xc5   : > { %v554_v24 = vpop.permute.xlu1 %553 }
  0xc6   : > { %597 = vmatpush.bf16.msra.mxu0 %v572_v23  ;;  %v562_v25 = vsel %vm561_vm6, %v554_v24, %v556_v10  ;;  %v714_v26 = vpop.permute.xlu2 %713 }
  0xc7   : > { %v569_v27 = vsel %vm201_vm0, %v562_v25, 0 }
  0xc8   : > { %v633_v28 = vpop.permute.xlu0 %632  ;;  %584 = vmatpush.bf16.msrb.mxu3 %v569_v27 }
  0xcb   : > { %970 = vmatmul.msk.bf16.vlgmr.msrb.gmra.mxu3 %vm197_vm1, %v969_v29 }
  0xcd   : > { %v635_v30 = vpop.permute.xlu1 %634 }
  0xce   : > { %v641_v31 = vsel %vm640_vm7, %v633_v28, %v635_v30  ;;  %v712_v33 = vpop.permute.xlu2 %711 }
  0xcf   : > { %v648_v34 = vsel %vm201_vm0, %v641_v31, 0  ;;  %v720_v35 = vsel %vm719_vm8, %v712_v33, %v714_v26 }
  0xd0   : > { %v560_v36 = vpop.permute.xlu0 %559  ;;  %663 = vmatpush.bf16.msra.mxu2 %v648_v34  ;;  %v727_v38 = vsel %vm201_vm0, %v720_v35, 0 }
  0xd1   : > { %v564_v37 = vsel %vm561_vm6, %v558_v16, %v560_v36  ;;  %966 = vmatmul.msk.bf16.vlgmr.msrb.gmra.mxu0 %vm197_vm1, %v965_v32 }
  0xd2   : > { %v575_v39 = vsel %vm201_vm0, %v564_v37, 0  ;;  %967 = vmatmul.msk.bf16.vlgmr.msrb.gmra.mxu1 %vm197_vm1, %v965_v32 }
  0xd3   : > { %968 = vmatmul.msk.bf16.vlgmr.msrb.gmra.mxu2 %vm197_vm1, %v965_v32  ;;  %610 = vmatpush.bf16.msra.mxu1 %v575_v39 }
  0xd5   : > { %v637_v40 = vpop.permute.xlu1 %636 }
  0xd6   : > { %v642_v41 = vsel %vm640_vm7, %v635_v30, %v637_v40  ;;  %v797_v53 = vpop.permute.xlu2 %796 }
  0xd7   : > { %742 = vmatpush.bf16.msrb.mxu1 %v727_v38  ;;  %v651_v42 = vsel %vm201_vm0, %v642_v41, 0 }
  0xd8   : > { %v716_v43 = vpop.permute.xlu0 %715  ;;  %676 = vmatpush.bf16.msra.mxu3 %v651_v42 }
  0xd9   : > { %v721_v45 = vsel %vm719_vm8, %v714_v26, %v716_v43 }
  0xda   : > { %v730_v46 = vsel %vm201_vm0, %v721_v45, 0 }
  0xdb   : > { %975 = vmatmul.msk.bf16.vlgmr.msra.gmra.mxu3 %vm197_vm1, %v973_v44  ;;  %755 = vmatpush.bf16.msrb.mxu2 %v730_v46 }
  0xdd   : > { %v639_v47 = vpop.permute.xlu1 %638 }
  0xde   : > { %v643_v48 = vsel %vm640_vm7, %v637_v40, %v639_v47 }
  0xdf   : > { %v654_v49 = vsel %vm201_vm0, %v643_v48, 0 }
  0xe0   : > { %v718_v50 = vpop.permute.xlu0 %717  ;;  %689 = vmatpush.bf16.msrb.mxu0 %v654_v49 }
  0xe1   : > { %v722_v51 = vsel %vm719_vm8, %v716_v43, %v718_v50  ;;  %971 = vmatmul.msk.bf16.vlgmr.msra.gmra.mxu0 %vm197_vm1, %v969_v29 }
  0xe2   : > { %v733_v52 = vsel %vm201_vm0, %v722_v51, 0  ;;  %972 = vmatmul.msk.bf16.vlgmr.msra.gmra.mxu1 %vm197_vm1, %v969_v29 }
  0xe3   : > { %974 = vmatmul.msk.bf16.vlgmr.msra.gmra.mxu2 %vm197_vm1, %v973_v44  ;;  %768 = vmatpush.bf16.msrb.mxu3 %v733_v52 }
  0xe5   : > { %v795_v54 = vpop.permute.xlu1 %794 }
  0xe6   : > { %v801_v55 = vsel %vm798_vm9, %v795_v54, %v797_v53 }
  0xe7   : > { %v812_v56 = vsel %vm201_vm0, %v801_v55, 0 }
  0xe8   : > { %847 = vmatpush.bf16.msra.mxu2 %v812_v56  ;;  %v791_v58 = vpop.permute.xlu0 %790 }
  0xeb   : > { %980 = vmatmul.msk.bf16.vlgmr.msrb.gmra.mxu3 %vm197_vm1, %v977_v57 }
  0xed   : > { %v793_v59 = vpop.permute.xlu1 %792 }
  0xee   : > { %v800_v60 = vsel %vm798_vm9, %v793_v59, %v795_v54  ;;  %v799_v61 = vsel %vm798_vm9, %v791_v58, %v793_v59 }
  0xef   : > { %v809_v62 = vsel %vm201_vm0, %v800_v60, 0  ;;  %v806_v63 = vsel %vm201_vm0, %v799_v61, 0 }
  0xf0   : > { %834 = vmatpush.bf16.msra.mxu1 %v809_v62  ;;  %821 = vmatpush.bf16.msra.mxu0 %v806_v63 }
  0xf1   : > { %976 = vmatmul.msk.bf16.vlgmr.msrb.gmra.mxu0 %vm197_vm1, %v973_v44 }
  0xf2   : > { %978 = vmatmul.msk.bf16.vlgmr.msrb.gmra.mxu1 %vm197_vm1, %v977_v57 }
  0xf3   : > { %979 = vmatmul.msk.bf16.vlgmr.msrb.gmra.mxu2 %vm197_vm1, %v977_v57 }
 0x101   : > { %982 = vmatmul.msk.bf16.vlgmr.msra.gmra.mxu0 %vm197_vm1, %v981_v0 }
 0x102   : > { %983 = vmatmul.msk.bf16.vlgmr.msra.gmra.mxu1 %vm197_vm1, %v981_v0 }
 0x103   : > { %984 = vmatmul.msk.bf16.vlgmr.msra.gmra.mxu2 %vm197_vm1, %v981_v0 }
 0x11d   : > { %v220_v5 = vpop.f32.mrf.mxu0  ;;  %v233_v6 = vpop.f32.mrf.mxu1 }
 0x11e   : > { %v274_v7 = vadd.f32 %v273_v1, %v220_v5 }
 0x125   : > { %v222_v9 = vpop.f32.mrf.mxu0  ;;  %v235_v10 = vpop.f32.mrf.mxu1 }
 0x126   : > { %v246_v8 = vpop.f32.mrf.mxu2 }
 0x12e   : > { %v248_v11 = vpop.f32.mrf.mxu2  ;;  %v286_v12 = vpop.f32.mrf.mxu0 }
 0x12f   : > { %v299_v13 = vpop.f32.mrf.mxu1  ;;  %v287_v14 = vadd.f32 %v286_v12, %v233_v6  ;;  %v362_v16 = vpop.f32.mrf.mxu3 }
 0x130   : > { %v300_v15 = vadd.f32 %v299_v13, %v246_v8 }
 0x131   : > { %v380_v17 = vadd.f32 %v362_v16, %v287_v14 }
 0x136   : > { %v349_v18 = vpop.f32.mrf.mxu2  ;;  %v288_v19 = vpop.f32.mrf.mxu0 }
 0x137   : > { %v301_v20 = vpop.f32.mrf.mxu1  ;;  %v364_v21 = vpop.f32.mrf.mxu3  ;;  %v379_v50 = vadd.f32 %v349_v18, %v274_v7 }
 0x138   : > { %v860_v7 = vpop.permute.xlu2 %859 }
 0x13e   : > { %v351_v22 = vpop.f32.mrf.mxu2  ;;  %v375_v23 = vpop.f32.mrf.mxu0 }
 0x13f   : > { %v428_v24 = vpop.f32.mrf.mxu1  ;;  %v454_v25 = vpop.f32.mrf.mxu3  ;;  %v381_v55 = vadd.f32 %v375_v23, %v300_v15 }
 0x140   : > { %v458_v51 = vadd.f32 %v428_v24, %v379_v50 }
 0x141   : > { %v460_v62 = vadd.f32 %v454_v25, %v381_v55 }
 0x146   : > { %v441_v26 = vpop.f32.mrf.mxu2  ;;  %v377_v27 = vpop.f32.mrf.mxu0 }
 0x147   : > { %v430_v28 = vpop.f32.mrf.mxu1  ;;  %v456_v29 = vpop.f32.mrf.mxu3  ;;  %v459_v52 = vadd.f32 %v441_v26, %v380_v17 }
 0x14e   : > { %v443_v30 = vpop.f32.mrf.mxu2  ;;  %v507_v31 = vpop.f32.mrf.mxu0 }
 0x14f   : > { %v520_v32 = vpop.f32.mrf.mxu1  ;;  %v586_v33 = vpop.f32.mrf.mxu3  ;;  %v537_v53 = vadd.f32 %v507_v31, %v458_v51 }
 0x150   : > { %v538_v56 = vadd.f32 %v520_v32, %v459_v52 }
 0x151   : > { %v616_v61 = vadd.f32 %v586_v33, %v537_v53 }
 0x156   : > { %v533_v34 = vpop.f32.mrf.mxu2  ;;  %v509_v35 = vpop.f32.mrf.mxu0 }
 0x157   : > { %v522_v36 = vpop.f32.mrf.mxu1  ;;  %v588_v37 = vpop.f32.mrf.mxu3  ;;  %v539_v0 = vadd.f32 %v533_v34, %v460_v62 }
 0x15e   : > { %v535_v38 = vpop.f32.mrf.mxu2  ;;  %v599_v39 = vpop.f32.mrf.mxu0 }
 0x15f   : > { %v612_v40 = vpop.f32.mrf.mxu1  ;;  %v678_v41 = vpop.f32.mrf.mxu3  ;;  %v617_v60 = vadd.f32 %v599_v39, %v538_v56 }
 0x160   : > { %v618_v4 = vadd.f32 %v612_v40, %v539_v0 }
 0x161   : > { %v696_v1 = vadd.f32 %v678_v41, %v617_v60 }
 0x166   : > { %v665_v42 = vpop.f32.mrf.mxu2  ;;  %v601_v43 = vpop.f32.mrf.mxu0 }
 0x167   : > { %v614_v44 = vpop.f32.mrf.mxu1  ;;  %v680_v45 = vpop.f32.mrf.mxu3  ;;  %v695_v63 = vadd.f32 %v665_v42, %v616_v61 }
 0x16e   : > { %v667_v46 = vpop.f32.mrf.mxu2  ;;  %v691_v47 = vpop.f32.mrf.mxu0 }
 0x16f   : > { %v744_v48 = vpop.f32.mrf.mxu1  ;;  %v770_v49 = vpop.f32.mrf.mxu3  ;;  %v697_v10 = vadd.f32 %v691_v47, %v618_v4 }
 0x170   : > { %v774_v2 = vadd.f32 %v744_v48, %v695_v63 }
 0x171   : > { %v776_v14 = vadd.f32 %v770_v49, %v697_v10 }
 0x176   : > { %v757_v54 = vpop.f32.mrf.mxu2  ;;  %v693_v57 = vpop.f32.mrf.mxu0 }
 0x177   : > { %v746_v58 = vpop.f32.mrf.mxu1  ;;  %v772_v59 = vpop.f32.mrf.mxu3  ;;  %v775_v5 = vadd.f32 %v757_v54, %v696_v1 }
 0x17e   : > { %v759_v3 = vpop.f32.mrf.mxu2  ;;  %v823_v6 = vpop.f32.mrf.mxu0 }
 0x17f   : > { %v853_v8 = vadd.f32 %v823_v6, %v774_v2  ;;  %v836_v9 = vpop.f32.mrf.mxu1 }
 0x180   : > { %v854_v11 = vadd.f32 %v836_v9, %v775_v5 }
 0x181   : > { %v862_v12 = vadd.f32 %v860_v7, %v853_v8 }
 0x182   : > { %v863_v13 = vadd.f32 %v860_v7, %v854_v11 }
 0x183   : > { %865 = vst [vmem:[%s163_s27] sm:$0xff] %v862_v12 }
 0x184   : > { %866 = vst [vmem:[%s163_s27 + $0x8] sm:$0xff] %v863_v13 }
 0x186   : > { %v849_v15 = vpop.f32.mrf.mxu2  ;;  %v825_v17 = vpop.f32.mrf.mxu0 }
 0x187   : > { %v855_v16 = vadd.f32 %v849_v15, %v776_v14  ;;  %v838_v18 = vpop.f32.mrf.mxu1 }
 0x189   : > { %v864_v19 = vadd.f32 %v860_v7, %v855_v16 }
 0x18b   : > { %867 = vst [vmem:[%s163_s27 + $0x10] sm:$0xff] %v864_v19 }
 0x18c   : > { %1068 = shalt.err (!%p1065_p3)
}
 0x18d   : > { %991 = dma.vmem_to_hbm [thread:$0]  (%p1172_p5), %s883_s28, 384, %s885_s29, %s869_s16  }
 0x18e   : > { %v851_v20 = vpop.f32.mrf.mxu2 }
 0x18f PF: > { %p997_p4 = scmp.ge.s32.totalorder %s1103_s15, 2  ;;  %s896_s10 = sand.u32 1, %s1091_s12  }
 0x190   : > { %s897_s11 = scalar_lea.sflag [#allocation3], %s896_s10 }
 0x191   : > { %p994_p7 = pnand %p997_p4, %p1176_p6 }
 0x193   : > { %p995_p8 = pneg %p994_p7 }
 0x195   : > { %1086 = dma.done.wait (%p995_p8), %s897_s11, 384  }
 0x196   : > { %1088 = vsyncadd (%p995_p8), %s897_s11, 4294966912  ;;  %p13_p9 = scmp.ge.s32.totalorder %s1159_s18, 4   ;;  %s1347_s12 = smov %s1095_s13 }
 0x197   : > { %s1348_s13 = smov %s1099_s14  ;;  %s1349_s14 = smov %s1170_s21 }
 0x198   : > { %s1350_s15 = smov %s1159_s18  ;;  %15 = sbr.rel (!%p13_p9) target bundleno = 3 (0x3), region = 75 }
 0x19d   :  { %903 = vsyncpa [#allocation3], 1 }
 0x19e   :  { %905 = vsyncpa [#allocation3 + $0x1], 1 }

</bundles_post_ra>
